<compile_context>
chip_gen: v7x
topology: tpu7x:2x2x1
jax: 0.10.0
libtpu: 0.0.40
codegen_flags: <defaults>
</compile_context>

<pallas_src>
import jax
import jax.numpy as jnp
from jax.experimental import pallas as pl
from jax.experimental.pallas import tpu as pltpu


def _round_up(x, m):
    return ((x + m - 1) // m) * m


def _dfl_kernel(x_ref,                    # (TILE_N, D_in)      f32
                w1_ref, b1_ref,           # (D_in, H) bf16, (1, H) f32
                w2f_ref,                  # (H, D_out)           bf16
                wxu_ref,                  # (D_in, D_out)        bf16
                bf_ref,                   # (1, D_out)           f32
                out_ref):                 # (TILE_N, D_out)      f32
    xs = x_ref[...].astype(jnp.bfloat16)

    # g(x) hidden layer (ReLU x3 == ReLU once); zero-padded w1 rows make the
    # u columns of x_star contribute nothing, so xs can be used directly.
    h = jnp.dot(xs, w1_ref[...], preferred_element_type=jnp.float32) + b1_ref[...]
    h = jnp.maximum(h, 0.0)

    # Fused A/H head with eta folded in:  out = x_star @ W_xu' + h @ W2' + b'
    out = jnp.dot(xs, wxu_ref[...], preferred_element_type=jnp.float32)
    out = out + jnp.dot(h.astype(jnp.bfloat16), w2f_ref[...],
                        preferred_element_type=jnp.float32)
    out_ref[...] = out + bf_ref[...]


def learned_dfl_forward(x_star, params, *, tile_n=8192):
    """x_star: (N, D_x + D_u) f32. Returns (x_t, eta_t), both f32."""
    N, D_in = x_star.shape
    w1, b1, w2, b2, wa, ba, wh, bh = params
    D_x, H = w1.shape
    D_eta = w2.shape[1]
    D_u = D_in - D_x
    D_out = D_x + D_eta

    # ---- wrapper-side algebra (f32, exact reassociation) --------------------
    w_head = jnp.concatenate([wa, wh], axis=1)          # (D_xi, D_out), rows [x; eta; u]
    b_head = jnp.concatenate([ba, bh], axis=1)          # (1, D_out)
    w_head_x = w_head[:D_x]
    w_head_eta = w_head[D_x:D_x + D_eta]
    w_head_u = w_head[D_x + D_eta:]

    w1_pad = jnp.concatenate([w1, jnp.zeros((D_u, H), w1.dtype)], axis=0)   # (D_in, H)
    w_xu = jnp.concatenate([w_head_x, w_head_u], axis=0)                    # (D_in, D_out)
    w2_fold = w2 @ w_head_eta                                               # (H, D_out)
    b_fused = b2 @ w_head_eta + b_head                                      # (1, D_out)

    # bf16 MXU operands, f32 biases / accumulation.
    w1_pad = w1_pad.astype(jnp.bfloat16)
    w_xu = w_xu.astype(jnp.bfloat16)
    w2_fold = w2_fold.astype(jnp.bfloat16)
    b1_f = b1.astype(jnp.float32)
    b_fused = b_fused.astype(jnp.float32)

    # ---- tiling: big tiles, multiple of 8, but keep >=2 grid steps (v7x) ----
    cap = _round_up(pl.cdiv(N, 2), 8)
    tn = max(8, min(_round_up(tile_n, 8), cap))
    grid = (pl.cdiv(N, tn),)

    def row_spec(cols):
        return pl.BlockSpec((tn, cols), lambda i: (i, 0))

    def resident_spec(shape):
        # Full block, same index every step -> stays VMEM-resident across the grid.
        return pl.BlockSpec(shape, lambda i: (0, 0))

    out = pl.pallas_call(
        _dfl_kernel,
        out_shape=jax.ShapeDtypeStruct((N, D_out), jnp.float32),
        grid_spec=pltpu.PrefetchScalarGridSpec(
            num_scalar_prefetch=0,
            grid=grid,
            in_specs=[
                row_spec(D_in),
                resident_spec(w1_pad.shape), resident_spec(b1_f.shape),
                resident_spec(w2_fold.shape),
                resident_spec(w_xu.shape),
                resident_spec(b_fused.shape),
            ],
            out_specs=row_spec(D_out),
        ),
        compiler_params=pltpu.CompilerParams(
            dimension_semantics=("parallel",)),
    )(x_star, w1_pad, b1_f, w2_fold, w_xu, b_fused)

    return out[:, :D_x], out[:, D_x:]


def init_params(key, D_x, D_eta, D_u, H):
    """Deterministic synthetic parameters (weights stored (in, out))."""
    D_xi = D_x + D_eta + D_u
    ks = jax.random.split(key, 8)
    scale = 0.1
    w1 = scale * jax.random.normal(ks[0], (D_x, H), jnp.float32)
    b1 = scale * jax.random.normal(ks[1], (1, H), jnp.float32)
    w2 = scale * jax.random.normal(ks[2], (H, D_eta), jnp.float32)
    b2 = scale * jax.random.normal(ks[3], (1, D_eta), jnp.float32)
    wa = scale * jax.random.normal(ks[4], (D_xi, D_x), jnp.float32)
    ba = scale * jax.random.normal(ks[5], (1, D_x), jnp.float32)
    wh = scale * jax.random.normal(ks[6], (D_xi, D_eta), jnp.float32)
    bh = scale * jax.random.normal(ks[7], (1, D_eta), jnp.float32)
    return (w1, b1, w2, b2, wa, ba, wh, bh)


def reference_forward(x_star, params, D_x):
    """Pure-JAX f32 reference mirroring the PyTorch module exactly."""
    w1, b1, w2, b2, wa, ba, wh, bh = params
    x = x_star[:, :D_x]
    u = x_star[:, D_x:]
    h = jnp.maximum(x @ w1 + b1, 0.0)   # ReLU applied 3x == ReLU once
    eta = h @ w2 + b2
    xi = jnp.concatenate([x, eta, u], axis=1)
    return xi @ wa + ba, xi @ wh + bh


if __name__ == "__main__":
    # Small shapes consistent with the module's forward.
    D_x, D_eta, D_u, H = 8, 8, 8, 32
    N = 64   # -> tile of 32 rows, grid of 2 steps (exercises the parallel grid)

    key = jax.random.PRNGKey(0)
    k_in, k_p = jax.random.split(key)
    x_star = jax.random.normal(k_in, (N, D_x + D_u), jnp.float32)
    params = init_params(k_p, D_x, D_eta, D_u, H)

    x_t, eta_t = learned_dfl_forward(x_star, params)
    x_t, eta_t = jax.block_until_ready((x_t, eta_t))

    x_ref, eta_ref = reference_forward(x_star, params, D_x)
    # bf16 MXU operands -> loosen tolerance vs. the exact f32 reference.
    assert jnp.allclose(x_t, x_ref, atol=2e-2, rtol=2e-2), "x_t mismatch vs reference"
    assert jnp.allclose(eta_t, eta_ref, atol=2e-2, rtol=2e-2), "eta_t mismatch vs reference"

    print("KERNEL_OK")
</pallas_src>

<mosaic_0001>
module attributes {stable_mosaic.version = 11 : i64} {
  func.func @_dfl_kernel(%arg0: i32, %arg1: memref<32x16xf32, #tpu.memory_space<vmem>>, %arg2: memref<16x32xbf16, #tpu.memory_space<vmem>>, %arg3: memref<1x32xf32, #tpu.memory_space<vmem>>, %arg4: memref<32x16xbf16, #tpu.memory_space<vmem>>, %arg5: memref<16x16xbf16, #tpu.memory_space<vmem>>, %arg6: memref<1x16xf32, #tpu.memory_space<vmem>>, %arg7: memref<32x16xf32, #tpu.memory_space<vmem>>) attributes {dimension_semantics = [#tpu.dimension_semantics<parallel>], iteration_bounds = array<i64: 2>, scalar_prefetch = 0 : i64, scratch_operands = 0 : i64, tpu.core_type = #tpu.core_type<tc>, window_params = [{transform_indices = @transform_0, window_bounds = array<i64: 32, 16>}, {pipeline_mode = #tpu.pipeline_mode<synchronous>, transform_indices = @transform_1, window_bounds = array<i64: 16, 32>}, {pipeline_mode = #tpu.pipeline_mode<synchronous>, transform_indices = @transform_2, window_bounds = array<i64: 1, 32>}, {pipeline_mode = #tpu.pipeline_mode<synchronous>, transform_indices = @transform_3, window_bounds = array<i64: 32, 16>}, {pipeline_mode = #tpu.pipeline_mode<synchronous>, transform_indices = @transform_4, window_bounds = array<i64: 16, 16>}, {pipeline_mode = #tpu.pipeline_mode<synchronous>, transform_indices = @transform_5, window_bounds = array<i64: 1, 16>}, {transform_indices = @transform_6, window_bounds = array<i64: 32, 16>}]} {
    %c0 = arith.constant 0 : index
    %c0_0 = arith.constant 0 : index
    %0 = vector.load %arg1[%c0, %c0_0] : memref<32x16xf32, #tpu.memory_space<vmem>>, vector<32x16xf32>
    %1 = arith.truncf %0 : vector<32x16xf32> to vector<32x16xbf16>
    %c0_1 = arith.constant 0 : index
    %c0_2 = arith.constant 0 : index
    %2 = vector.load %arg2[%c0_1, %c0_2] : memref<16x32xbf16, #tpu.memory_space<vmem>>, vector<16x32xbf16>
    %cst = arith.constant dense<0.000000e+00> : vector<32x32xf32>
    %3 = tpu.matmul %1, %2, %cst {dimension_numbers = #tpu.dot_dimension_numbers<[1], [0], [0], [1], [0, 0, 1, 1], [], []>} : vector<32x16xbf16>, vector<16x32xbf16>, vector<32x32xf32> -> vector<32x32xf32>
    %c0_3 = arith.constant 0 : index
    %c0_4 = arith.constant 0 : index
    %4 = vector.load %arg3[%c0_3, %c0_4] : memref<1x32xf32, #tpu.memory_space<vmem>>, vector<1x32xf32>
    %5 = vector.broadcast %4 : vector<1x32xf32> to vector<32x32xf32>
    %6 = arith.addf %3, %5 : vector<32x32xf32>
    %cst_5 = arith.constant 0.000000e+00 : f32
    %7 = vector.broadcast %cst_5 : f32 to vector<32x32xf32>
    %8 = arith.maximumf %6, %7 : vector<32x32xf32>
    %c0_6 = arith.constant 0 : index
    %c0_7 = arith.constant 0 : index
    %9 = vector.load %arg5[%c0_6, %c0_7] : memref<16x16xbf16, #tpu.memory_space<vmem>>, vector<16x16xbf16>
    %cst_8 = arith.constant dense<0.000000e+00> : vector<32x16xf32>
    %10 = tpu.matmul %1, %9, %cst_8 {dimension_numbers = #tpu.dot_dimension_numbers<[1], [0], [0], [1], [0, 0, 1, 1], [], []>} : vector<32x16xbf16>, vector<16x16xbf16>, vector<32x16xf32> -> vector<32x16xf32>
    %11 = arith.truncf %8 : vector<32x32xf32> to vector<32x32xbf16>
    %c0_9 = arith.constant 0 : index
    %c0_10 = arith.constant 0 : index
    %12 = vector.load %arg4[%c0_9, %c0_10] : memref<32x16xbf16, #tpu.memory_space<vmem>>, vector<32x16xbf16>
    %cst_11 = arith.constant dense<0.000000e+00> : vector<32x16xf32>
    %13 = tpu.matmul %11, %12, %cst_11 {dimension_numbers = #tpu.dot_dimension_numbers<[1], [0], [0], [1], [0, 0, 1, 1], [], []>} : vector<32x32xbf16>, vector<32x16xbf16>, vector<32x16xf32> -> vector<32x16xf32>
    %14 = arith.addf %10, %13 : vector<32x16xf32>
    %c0_12 = arith.constant 0 : index
    %c0_13 = arith.constant 0 : index
    %15 = vector.load %arg6[%c0_12, %c0_13] : memref<1x16xf32, #tpu.memory_space<vmem>>, vector<1x16xf32>
    %16 = vector.broadcast %15 : vector<1x16xf32> to vector<32x16xf32>
    %17 = arith.addf %14, %16 : vector<32x16xf32>
    %c0_14 = arith.constant 0 : index
    %c0_15 = arith.constant 0 : index
    %18 = vector.load %arg7[%c0_14, %c0_15] : memref<32x16xf32, #tpu.memory_space<vmem>>, vector<32x16xf32>
    tpu.vector_store %arg7[%c0_14, %c0_15], %17 {strides = array<i32>} : memref<32x16xf32, #tpu.memory_space<vmem>>, vector<32x16xf32>,
    return
  }
  func.func @transform_0(%arg0: i32) -> (i32, i32) {
    %c0_i32 = arith.constant 0 : i32
    %c0_i32_0 = arith.constant 0 : i32
    return %arg0, %c0_i32 : i32, i32
  }
  func.func @transform_1(%arg0: i32) -> (i32, i32) {
    %c0_i32 = arith.constant 0 : i32
    %c0_i32_0 = arith.constant 0 : i32
    %c0_i32_1 = arith.constant 0 : i32
    return %c0_i32, %c0_i32_0 : i32, i32
  }
  func.func @transform_2(%arg0: i32) -> (i32, i32) {
    %c0_i32 = arith.constant 0 : i32
    %c0_i32_0 = arith.constant 0 : i32
    %c0_i32_1 = arith.constant 0 : i32
    return %c0_i32, %c0_i32_0 : i32, i32
  }
  func.func @transform_3(%arg0: i32) -> (i32, i32) {
    %c0_i32 = arith.constant 0 : i32
    %c0_i32_0 = arith.constant 0 : i32
    %c0_i32_1 = arith.constant 0 : i32
    return %c0_i32, %c0_i32_0 : i32, i32
  }
  func.func @transform_4(%arg0: i32) -> (i32, i32) {
    %c0_i32 = arith.constant 0 : i32
    %c0_i32_0 = arith.constant 0 : i32
    %c0_i32_1 = arith.constant 0 : i32
    return %c0_i32, %c0_i32_0 : i32, i32
  }
  func.func @transform_5(%arg0: i32) -> (i32, i32) {
    %c0_i32 = arith.constant 0 : i32
    %c0_i32_0 = arith.constant 0 : i32
    %c0_i32_1 = arith.constant 0 : i32
    return %c0_i32, %c0_i32_0 : i32, i32
  }
  func.func @transform_6(%arg0: i32) -> (i32, i32) {
    %c0_i32 = arith.constant 0 : i32
    %c0_i32_0 = arith.constant 0 : i32
    return %arg0, %c0_i32 : i32, i32
  }
}

</mosaic_0001>

<bundles_post_ra>
// kernel: tpu_custom_call.1
= control target key start
LH: loop header
LB: loop body
LE: loop exit
PB: predicated region body
PF: predicated region fallthrough
CT: control target
= control target key end

     0   :  { %s651_s21 = smov 0   ;;  %s701_s0 = inlined_call_operand.vmem [shape: f32[64,16], index: 0, kind: input, shape index: {}]   ;;  %s702_s1 = inlined_call_operand.vmem [shape: bf16[16,32], index: 1, kind: input, shape index: {}]   ;;  %s703_s2 = inlined_call_operand.vmem [shape: f32[1,32], index: 2, kind: input, shape index: {}]   ;;  %s704_s3 = inlined_call_operand.vmem [shape: bf16[32,16], index: 3, kind: input, shape index: {}]   ;;  %s705_s4 = inlined_call_operand.vmem [shape: bf16[16,16], index: 4, kind: input, shape index: {}]   ;;  %s706_s5 = inlined_call_operand.vmem [shape: f32[1,16], index: 5, kind: input, shape index: {}]   ;;  %s707_s6 = inlined_call_operand.vmem [shape: f32[64,16], index: 6, kind: output, shape index: {}]  }
   0x1 LB: > { %s539_s22 = sadd.s32 4294967295, %s614_s21   ;;  %p543_p0 = scmp.ge.s32.totalorder %s614_s21, 1  ;;  %s614_s21 = sphi %s651_s21, %s16_s21  }
   0x2   : > { %p213_p1 = scmp.lt.s32.totalorder %s614_s21, 3 }
   0x4   : > { %p214_p2 = pnand %p543_p0, %p213_p1 }
   0x5   : > { %v604_v0 = vld [vmem:[%s702_s1] sm:$0xff] (!%p214_p2)   ;;  %s544_s25 = sshll.u32 (!%p214_p2), %s539_s22, 2  ;;  %vm277_vm0 = vcmask (!%p214_p2), 130048   ;;  %v607_v9 = vld [vmem:[%s704_s3 + $0x8] sm:$0xff] (!%p214_p2)   ;;  %vm357_vm1 = vcmask (!%p214_p2), 261120  }
   0x6   : > { %217 = sbr.rel (%p214_p2) target bundleno = 462 (0x1ce), region = 44  ;;  %p244_p3 = scmp.lt.s32.totalorder (!%p214_p2), %s544_s25, 7  ;;  %572 = vmatprep.subr.bf16.mxu0 (!%p214_p2), %v604_v0  ;;  %v605_v7 = vld [vmem:[%s704_s3] sm:$0xff] (!%p214_p2)  }
   0x7   : > { %573 = vmatpush3.bf16.msra.mxu0 (!%p214_p2), %v604_v0  ;;  %v606_v8 = vld [vmem:[%s705_s4] sm:$0xff] (!%p214_p2)  }
   0x8   : > { %578 = vmatprep.subr.bf16.mxu0 (!%p214_p2), %v605_v7  ;;  %586 = vmatprep.subr.bf16.mxu1 (!%p214_p2), %v606_v8  ;;  %v548_v10 = vld [vmem:[%s703_s2] ss:$0 sm:$0xff] (!%p214_p2) }
   0x9   : > { %587 = vmatpush3.bf16.msra.mxu1 (!%p214_p2), %v606_v8  ;;  %v559_v31 = vld [vmem:[%s706_s5] ss:$0 sm:$0xff] (!%p214_p2) }
   0xd   : > { %s709_s25 = smov (!%p244_p3, %s544_s25), 7 }
   0xe   : > { %s545_s26 = sshll.u32 %s709_s25, 3 }
   0xf   : > { %s247_s29 = scalar_lea.vmem %s701_s0, %s545_s26  ;;  %s253_s18 = scalar_lea.vmem %s707_s6, %s545_s26 }
  0x10   : > { %v256_v1 = vld [vmem:[%s247_s29] sm:$0xff]  ;;  %v257_v2 = vld [vmem:[%s247_s29 + $0x8] sm:$0xff]  ;;  %v258_v3 = vld [vmem:[%s247_s29 + $0x10] sm:$0xff] }
  0x11   : > { %v260_v4 = vpack.c.bf16 %v257_v2, %v256_v1  ;;  %v259_v5 = vld [vmem:[%s247_s29 + $0x18] sm:$0xff] }
  0x12   : > { %v261_v6 = vpack.c.bf16 %v259_v5, %v258_v3 }
  0x13   : > { %574 = vmatprep.mubr.msk.bf16.mxu0 %vm277_vm0, %v260_v4  ;;  %588 = vmatprep.mubr.msk.bf16.mxu1 %vm277_vm0, %v260_v4 }
  0x14   : > { %575 = vmatmul.mubr.msk.bf16.vlgmr.msra.gmra.mrb[0].mxu0 %vm277_vm0, %v261_v6  ;;  %589 = vmatmul.mubr.msk.bf16.vlgmr.msra.gmra.mrb[0].mxu1 %vm277_vm0, %v261_v6 }
  0x15   : > { %579 = vmatpush3.bf16.msra.mxu0 %v605_v7 }
  0x16   : > { %580 = vmatprep.subr.bf16.mxu0 %v607_v9 }
  0x19   : > { %581 = vmatpush3.bf16.msra.mxu0 %v607_v9 }
  0xe7   : > { %v576_v11 = vpop.f32.mrb[0].mxu0  ;;  %v590_v25 = vpop.f32.mrb[0].mxu1 }
  0xe8   : > { %v327_v12 = vadd.f32 %v576_v11, %v548_v10  ;;  %v318_v13 = vpop.f32.mrb[1].mxu0  ;;  %v453_v26 = vpop.f32.mrb[1].mxu1 }
  0xe9   : > { %v319_v14 = vadd.f32 %v548_v10, %v318_v13  ;;  %v577_v15 = vpop.f32.mrb[2].mxu0  ;;  %v591_v27 = vpop.f32.mrb[2].mxu1 }
  0xea   : > { %v330_v16 = vadd.f32 %v577_v15, %v548_v10  ;;  %v321_v17 = vpop.f32.mrb[3].mxu0  ;;  %v335_v19 = vmax.f32 %v327_v12, 0.0  ;;  %v456_v28 = vpop.f32.mrb[3].mxu1 }
  0xeb   : > { %v322_v18 = vadd.f32 %v548_v10, %v321_v17  ;;  %v333_v21 = vmax.f32 %v319_v14, 0.0 }
  0xec   : > { %v336_v20 = vmax.f32 %v330_v16, 0.0 }
  0xed   : > { %v334_v22 = vmax.f32 %v322_v18, 0.0 }
  0xee   : > { %v340_v23 = vpack.c.bf16 %v336_v20, %v335_v19 }
  0xef   : > { %v339_v24 = vpack.c.bf16 %v334_v22, %v333_v21 }
  0xf1   : > { %582 = vmatprep.mubr.msk.bf16.mxu0 %vm357_vm1, %v339_v24 }
  0xf2   : > { %583 = vmatmul.mubr.msk.bf16.vlgmr.msra.gmra.mrb[4].mxu0 %vm357_vm1, %v340_v23 }
 0x1c5   : > { %v584_v29 = vpop.f32.mrb[4].mxu0 }
 0x1c6   : > { %v462_v30 = vadd.f32 %v590_v25, %v584_v29  ;;  %v398_v32 = vpop.f32.mrb[5].mxu0 }
 0x1c7   : > { %v454_v33 = vadd.f32 %v453_v26, %v398_v32  ;;  %v585_v34 = vpop.f32.mrb[6].mxu0 }
 0x1c8   : > { %v465_v35 = vadd.f32 %v591_v27, %v585_v34  ;;  %v401_v36 = vpop.f32.mrb[7].mxu0  ;;  %v477_v40 = vadd.f32 %v559_v31, %v462_v30 }
 0x1c9   : > { %v475_v37 = vadd.f32 %v559_v31, %v454_v33  ;;  %v457_v38 = vadd.f32 %v456_v28, %v401_v36 }
 0x1ca   : > { %v478_v41 = vadd.f32 %v559_v31, %v465_v35  ;;  %481 = vst.msk [vmem:[%s253_s18 + $0x10] sm:$0xff] %vm277_vm0, %v477_v40 }
 0x1cb   : > { %479 = vst.msk [vmem:[%s253_s18] sm:$0xff] %vm277_vm0, %v475_v37  ;;  %v476_v39 = vadd.f32 %v559_v31, %v457_v38 }
 0x1cc   : > { %482 = vst.msk [vmem:[%s253_s18 + $0x18] sm:$0xff] %vm277_vm0, %v478_v41 }
 0x1cd   : > { %480 = vst.msk [vmem:[%s253_s18 + $0x8] sm:$0xff] %vm277_vm0, %v476_v39 }
 0x1ce PF: > { %s16_s21 = sadd.s32 1, %s614_s21  }
 0x1cf   : > { %p13_p4 = scmp.ge.s32.totalorder %s16_s21, 4  }
 0x1d1   :  { %15 = sbr.rel (!%p13_p4) target bundleno = 1 (0x1), region = 74 }

</bundles_post_ra>
